<compile_context>
chip_gen: v6e
topology: v6e:2x2x1
jax: 0.10.0
libtpu: 0.0.40
codegen_flags: <defaults>
</compile_context>

<pallas_src>
import functools
import math

import jax
import jax.numpy as jnp
from jax.experimental import pallas as pl
from jax.experimental.pallas import tpu as pltpu

_SQRT2 = math.sqrt(2.0)


def _round_up(x, m):
    return (x + m - 1) // m * m


def _gelu_exact(x):
    # x * 0.5 * (1 + erf(x / sqrt(2)))  -- matches the PyTorch reference gelu
    return x * 0.5 * (1.0 + jax.lax.erf(x / jnp.float32(_SQRT2)))


# ---------------------------------------------------------------------------
# Kernel
# ---------------------------------------------------------------------------
def _visual_head_kernel(x_ref, wd_ref, norm_ref, wh_ref, bh_ref,
                        feat_ref, coord_ref, label_ref, *, eps):
    # ---- BertPredictionHeadTransform: dense -> gelu -> LayerNorm ----------
    # Cast x on the fly (free VPU work hidden under the MXU); x stays in its
    # HBM dtype so the wrapper never does an extra cast/pad pass over it.
    x = x_ref[...].astype(wd_ref.dtype)
    h = jnp.dot(x, wd_ref[...], preferred_element_type=jnp.float32)
    h = h + norm_ref[0:1, :]                                   # + bd
    h = _gelu_exact(h)

    # LayerNorm stats in a single sweep: var = E[h^2] - E[h]^2 (clamped >= 0).
    mean = jnp.mean(h, axis=-1, keepdims=True)
    msq = jnp.mean(h * h, axis=-1, keepdims=True)
    var = jnp.maximum(msq - mean * mean, 0.0)
    h = (h - mean) * jax.lax.rsqrt(var + jnp.float32(eps))
    h = h * norm_ref[1:2, :] + norm_ref[2:3, :]                # * gamma + beta

    # ---- fused task decoders: one lane-dense MXU pass over [Wf | Wc | Wl] --
    out = jnp.dot(h.astype(wh_ref.dtype), wh_ref[...],
                  preferred_element_type=jnp.float32) + bh_ref[...]

    # Per-head widths are individually padded to 128 lanes, so these are
    # lane-aligned static slices (no cross-lane movement) and every store is
    # lane-dense.
    df = feat_ref.shape[-1]
    dc = coord_ref.shape[-1]
    feat_ref[...] = out[:, :df].astype(feat_ref.dtype)
    coord_ref[...] = out[:, df:df + dc].astype(coord_ref.dtype)
    label_ref[...] = out[:, df + dc:].astype(label_ref.dtype)


# ---------------------------------------------------------------------------
# Tiling / VMEM sizing helpers
# ---------------------------------------------------------------------------
def _vmem_tile_bytes(rows, cols, itemsize, buffers):
    # Account for (8, 128) VMEM tiling of each buffer.
    return (_round_up(max(int(rows), 1), 8)
            * _round_up(max(int(cols), 1), 128)
            * int(itemsize) * int(buffers))


def _choose_tile_n(N, H, d_heads_pad, *, x_itemsize, w_itemsize, out_itemsize,
                   tile_n_max, vmem_budget):
    d_tot = sum(d_heads_pad)
    # Resident operands. Estimated as double-buffered so the budget stays valid
    # even if the single-buffer (pl.Buffered(1)) request is not honored.
    resident = (_vmem_tile_bytes(H, H, w_itemsize, 2)
                + _vmem_tile_bytes(H, d_tot, w_itemsize, 2)
                + _vmem_tile_bytes(3, H, 4, 2)
                + _vmem_tile_bytes(1, d_tot, 4, 2))

    def usage(rows):
        per_tile = _vmem_tile_bytes(rows, H, x_itemsize, 2)            # x (dbl buf)
        per_tile += sum(_vmem_tile_bytes(rows, d, out_itemsize, 2)     # outputs
                        for d in d_heads_pad)
        per_tile += 2 * _vmem_tile_bytes(rows, H, 4, 1)                # h temps (f32)
        per_tile += _vmem_tile_bytes(rows, d_tot, 4, 1)                # fused f32 acc
        return resident + per_tile

    # Largest row tile that fits the budget (multiple of 8 sublanes).
    cap = max(8, (int(tile_n_max) // 8) * 8)
    while cap > 8 and usage(cap) > vmem_budget:
        cap -= 8

    # Minimize row padding, and give the grid >= 2 steps when there are enough
    # rows so v7x's two TensorCores both get work.
    num_tiles = max(pl.cdiv(N, cap), 2 if N >= 32 else 1)
    tile_n = _round_up(pl.cdiv(N, num_tiles), 8)
    if tile_n >= N:
        tile_n = N          # single full block: always a legal block shape
    return tile_n, usage(tile_n)


# ---------------------------------------------------------------------------
# Wrapper
# ---------------------------------------------------------------------------
def visual_head_forward(hidden_states, params, *, eps=1e-12,
                        matmul_dtype=jnp.bfloat16, out_dtype=None,
                        tile_n_max=512, lane_multiple=128,
                        vmem_budget_bytes=40 * 1024 * 1024,
                        single_buffer_weights=True):
    """Fused VisualHead forward.

    hidden_states: (B, S, H); params hold pre-transposed (in, out) weights:
      wd (H,H), bd (1,H), gamma (1,H), beta (1,H),
      wf (H,Df), bf (1,Df), wc (H,Dc), bc (1,Dc), wl (H,Dl), bl (1,Dl).
    """
    B, S, H = hidden_states.shape
    N = B * S
    out_dtype = jnp.dtype(jnp.float32 if out_dtype is None else out_dtype)

    Df = params["wf"].shape[1]
    Dc = params["wc"].shape[1]
    Dl = params["wl"].shape[1]
    # Per-head lane padding -> every kernel output is lane-dense and the wrapper
    # needs at most one cheap trailing-dim slice per head.
    # TODO(synk): on v6e/v7x with large head dims, bump lane_multiple to 256 to
    # fully fill the 2x256x256 MXU passes.
    Dpf = _round_up(Df, lane_multiple)
    Dpc = _round_up(Dc, lane_multiple)
    Dpl = _round_up(Dl, lane_multiple)
    Dp = Dpf + Dpc + Dpl

    wd = params["wd"].astype(matmul_dtype)
    wh = jnp.concatenate([
        jnp.pad(params["wf"], ((0, 0), (0, Dpf - Df))),
        jnp.pad(params["wc"], ((0, 0), (0, Dpc - Dc))),
        jnp.pad(params["wl"], ((0, 0), (0, Dpl - Dl))),
    ], axis=1).astype(matmul_dtype)
    bh = jnp.concatenate([
        jnp.pad(params["bf"], ((0, 0), (0, Dpf - Df))),
        jnp.pad(params["bc"], ((0, 0), (0, Dpc - Dc))),
        jnp.pad(params["bl"], ((0, 0), (0, Dpl - Dl))),
    ], axis=1).astype(jnp.float32)
    norm = jnp.concatenate([params["bd"], params["gamma"], params["beta"]],
                           axis=0).astype(jnp.float32)

    # No HBM pre-cast / pre-pad of x: keep its dtype, use a non-divisible grid.
    x = hidden_states.reshape(N, H)

    tile_n, vmem_used = _choose_tile_n(
        N, H, (Dpf, Dpc, Dpl),
        x_itemsize=x.dtype.itemsize,
        w_itemsize=jnp.dtype(matmul_dtype).itemsize,
        out_itemsize=out_dtype.itemsize,
        tile_n_max=tile_n_max, vmem_budget=vmem_budget_bytes)
    grid = (pl.cdiv(N, tile_n),)

    # Scoped-VMEM request derived from actual buffer sizes + headroom; never the
    # whole physical VMEM (v7x only has 64 MiB per TensorCore).
    vmem_limit = int(min(max(vmem_used * 5 // 4 + (8 << 20), 16 << 20), 56 << 20))

    w_isz = jnp.dtype(matmul_dtype).itemsize
    cost = pl.CostEstimate(
        flops=int(2 * N * H * (H + Dp)),
        transcendentals=int(N * H),
        bytes_accessed=int(N * H * x.dtype.itemsize
                           + H * H * w_isz + H * Dp * w_isz
                           + (3 * H + Dp) * 4
                           + N * Dp * out_dtype.itemsize),
    )

    def build(weight_buffers):
        wmode = ({"pipeline_mode": pl.Buffered(buffer_count=weight_buffers)}
                 if weight_buffers != 2 else {})
        return pl.pallas_call(
            functools.partial(_visual_head_kernel, eps=eps),
            out_shape=(
                jax.ShapeDtypeStruct((N, Dpf), out_dtype),
                jax.ShapeDtypeStruct((N, Dpc), out_dtype),
                jax.ShapeDtypeStruct((N, Dpl), out_dtype),
            ),
            grid_spec=pltpu.PrefetchScalarGridSpec(
                num_scalar_prefetch=0,
                grid=grid,
                in_specs=[
                    pl.BlockSpec((tile_n, H), lambda i: (i, 0)),       # x rows
                    pl.BlockSpec((H, H), lambda i: (0, 0), **wmode),   # Wd
                    pl.BlockSpec((3, H), lambda i: (0, 0), **wmode),   # bd/gamma/beta
                    pl.BlockSpec((H, Dp), lambda i: (0, 0), **wmode),  # [Wf|Wc|Wl]
                    pl.BlockSpec((1, Dp), lambda i: (0, 0), **wmode),  # fused bias
                ],
                out_specs=[
                    pl.BlockSpec((tile_n, Dpf), lambda i: (i, 0)),
                    pl.BlockSpec((tile_n, Dpc), lambda i: (i, 0)),
                    pl.BlockSpec((tile_n, Dpl), lambda i: (i, 0)),
                ],
            ),
            compiler_params=pltpu.CompilerParams(
                dimension_semantics=("parallel",),
                vmem_limit_bytes=vmem_limit,
            ),
            cost_estimate=cost,
        )

    if single_buffer_weights and hasattr(pl, "Buffered"):
        try:
            feat, coord, label = build(1)(x, wd, norm, wh, bh)
        except Exception:
            # pipeline_mode / Buffered(1) not supported on this backend/version:
            # fall back to default double buffering (correctness unaffected).
            feat, coord, label = build(2)(x, wd, norm, wh, bh)
    else:
        feat, coord, label = build(2)(x, wd, norm, wh, bh)

    return {
        "visual_feat": feat[:, :Df].reshape(B, S, Df),
        "visual_coord": coord[:, :Dc].reshape(B, S, Dc),
        "visual_label": label[:, :Dl].reshape(B, S, Dl),
    }


# ---------------------------------------------------------------------------
# Pure-JAX f32 reference of the PyTorch module (for the in-script check).
# ---------------------------------------------------------------------------
def _reference_forward_f32(x2d, params, eps=1e-12):
    hp = jax.lax.Precision.HIGHEST
    h = jnp.dot(x2d, params["wd"], precision=hp) + params["bd"][0]
    h = _gelu_exact(h)
    mean = jnp.mean(h, axis=-1, keepdims=True)
    var = jnp.mean((h - mean) ** 2, axis=-1, keepdims=True)
    h = (h - mean) / jnp.sqrt(var + eps) * params["gamma"][0] + params["beta"][0]
    return {
        "visual_feat": jnp.dot(h, params["wf"], precision=hp) + params["bf"][0],
        "visual_coord": jnp.dot(h, params["wc"], precision=hp) + params["bc"][0],
        "visual_label": jnp.dot(h, params["wl"], precision=hp) + params["bl"][0],
    }


def _make_params(key, H, Df, Dc, Dl):
    ks = jax.random.split(key, 10)
    scale = 0.02
    return {
        # nn.Linear stores (out, in); we keep the mathematically equivalent
        # pre-transposed (in, out) layout so y = x @ W + b.
        "wd": scale * jax.random.normal(ks[0], (H, H), jnp.float32),
        "bd": scale * jax.random.normal(ks[1], (1, H), jnp.float32),
        "gamma": jnp.ones((1, H), jnp.float32)
        + 0.1 * jax.random.normal(ks[2], (1, H), jnp.float32),
        "beta": 0.1 * jax.random.normal(ks[3], (1, H), jnp.float32),
        "wf": scale * jax.random.normal(ks[4], (H, Df), jnp.float32),
        "bf": scale * jax.random.normal(ks[5], (1, Df), jnp.float32),
        "wc": scale * jax.random.normal(ks[6], (H, Dc), jnp.float32),
        "bc": scale * jax.random.normal(ks[7], (1, Dc), jnp.float32),
        "wl": scale * jax.random.normal(ks[8], (H, Dl), jnp.float32),
        "bl": scale * jax.random.normal(ks[9], (1, Dl), jnp.float32),
    }


if __name__ == "__main__":
    key = jax.random.PRNGKey(0)
    kp, kx1, kx2 = jax.random.split(key, 3)

    # Small, module-consistent shapes.
    H = 32                       # hidden_size
    Df, Dc, Dl = 64, 8, 16       # visual_feat_dim, visual_coord_dim, visual_label_dim
    params = _make_params(kp, H, Df, Dc, Dl)

    def run_and_check(hidden_states, matmul_dtype, out_dtype, atol, rtol):
        B, S, _ = hidden_states.shape
        out = visual_head_forward(hidden_states, params,
                                  matmul_dtype=matmul_dtype, out_dtype=out_dtype)
        out = jax.tree_util.tree_map(jax.block_until_ready, out)
        ref = _reference_forward_f32(hidden_states.reshape(B * S, H), params)
        for k in ("visual_feat", "visual_coord", "visual_label"):
            got = out[k].astype(jnp.float32).reshape(ref[k].shape)
            err = float(jnp.max(jnp.abs(got - ref[k])))
            assert jnp.allclose(got, ref[k], atol=atol, rtol=rtol), (k, err)

    x1 = jax.random.normal(kx1, (2, 8, H), jnp.float32)     # tiny: single full block
    x2 = jax.random.normal(kx2, (3, 100, H), jnp.float32)   # 2-step grid, partial block

    # Performance configuration: bf16 MXU inputs + bf16 outputs (loose tolerance
    # appropriate for bf16 matmuls / outputs vs. the f32 reference).
    run_and_check(x1, jnp.bfloat16, jnp.bfloat16, 5e-2, 5e-2)
    run_and_check(x2, jnp.bfloat16, jnp.bfloat16, 5e-2, 5e-2)

    # Precision configuration: all-f32 path of the same kernel, tight tolerance.
    run_and_check(x2, jnp.float32, jnp.float32, 5e-3, 5e-3)

    print("KERNEL_OK")
</pallas_src>

<mosaic_0001>
module attributes {stable_mosaic.version = 11 : i64} {
  func.func @_visual_head_kernel(%arg0: i32, %arg1: memref<16x32xf32, #tpu.memory_space<vmem>>, %arg2: memref<32x32xbf16, #tpu.memory_space<vmem>>, %arg3: memref<3x32xf32, #tpu.memory_space<vmem>>, %arg4: memref<32x384xbf16, #tpu.memory_space<vmem>>, %arg5: memref<1x384xf32, #tpu.memory_space<vmem>>, %arg6: memref<16x128xbf16, #tpu.memory_space<vmem>>, %arg7: memref<16x128xbf16, #tpu.memory_space<vmem>>, %arg8: memref<16x128xbf16, #tpu.memory_space<vmem>>) attributes {dimension_semantics = [#tpu.dimension_semantics<parallel>], iteration_bounds = array<i64: 1>, scalar_prefetch = 0 : i64, scratch_operands = 0 : i64, tpu.core_type = #tpu.core_type<tc>, window_params = [{transform_indices = @transform_0, window_bounds = array<i64: 16, 32>}, {pipeline_mode = #tpu.pipeline_mode<synchronous>, transform_indices = @transform_1, window_bounds = array<i64: 32, 32>}, {pipeline_mode = #tpu.pipeline_mode<synchronous>, transform_indices = @transform_2, window_bounds = array<i64: 3, 32>}, {pipeline_mode = #tpu.pipeline_mode<synchronous>, transform_indices = @transform_3, window_bounds = array<i64: 32, 384>}, {pipeline_mode = #tpu.pipeline_mode<synchronous>, transform_indices = @transform_4, window_bounds = array<i64: 1, 384>}, {transform_indices = @transform_5, window_bounds = array<i64: 16, 128>}, {transform_indices = @transform_6, window_bounds = array<i64: 16, 128>}, {transform_indices = @transform_7, window_bounds = array<i64: 16, 128>}]} {
    %c0 = arith.constant 0 : index
    %c0_0 = arith.constant 0 : index
    %0 = vector.load %arg1[%c0, %c0_0] : memref<16x32xf32, #tpu.memory_space<vmem>>, vector<16x32xf32>
    %1 = arith.truncf %0 : vector<16x32xf32> to vector<16x32xbf16>
    %c0_1 = arith.constant 0 : index
    %c0_2 = arith.constant 0 : index
    %2 = vector.load %arg2[%c0_1, %c0_2] : memref<32x32xbf16, #tpu.memory_space<vmem>>, vector<32x32xbf16>
    %cst = arith.constant dense<0.000000e+00> : vector<16x32xf32>
    %3 = tpu.matmul %1, %2, %cst {dimension_numbers = #tpu.dot_dimension_numbers<[1], [0], [0], [1], [0, 0, 1, 1], [], []>} : vector<16x32xbf16>, vector<32x32xbf16>, vector<16x32xf32> -> vector<16x32xf32>
    %c0_3 = arith.constant 0 : index
    %c0_4 = arith.constant 0 : index
    %4 = vector.load %arg3[%c0_3, %c0_4] : memref<3x32xf32, #tpu.memory_space<vmem>>, vector<1x32xf32>
    %5 = vector.broadcast %4 : vector<1x32xf32> to vector<16x32xf32>
    %6 = arith.addf %3, %5 : vector<16x32xf32>
    %cst_5 = arith.constant 5.000000e-01 : f32
    %7 = vector.broadcast %cst_5 : f32 to vector<16x32xf32>
    %8 = arith.mulf %6, %7 : vector<16x32xf32>
    %cst_6 = arith.constant 1.41421354 : f32
    %9 = vector.broadcast %cst_6 : f32 to vector<16x32xf32>
    %10 = arith.divf %6, %9 : vector<16x32xf32>
    %11 = math.erf %10 : vector<16x32xf32>
    %cst_7 = arith.constant 1.000000e+00 : f32
    %12 = vector.broadcast %cst_7 : f32 to vector<16x32xf32>
    %13 = arith.addf %12, %11 : vector<16x32xf32>
    %14 = arith.mulf %8, %13 : vector<16x32xf32>
    %cst_8 = arith.constant dense<0.000000e+00> : vector<16xf32>
    %15 = vector.multi_reduction <add>, %14, %cst_8 [1] : vector<16x32xf32> to vector<16xf32>
    %16 = vector.shape_cast %15 : vector<16xf32> to vector<16x1xf32>
    %cst_9 = arith.constant 3.200000e+01 : f32
    %17 = vector.broadcast %cst_9 : f32 to vector<16x1xf32>
    %18 = arith.divf %16, %17 : vector<16x1xf32>
    %19 = arith.mulf %14, %14 : vector<16x32xf32>
    %cst_10 = arith.constant dense<0.000000e+00> : vector<16xf32>
    %20 = vector.multi_reduction <add>, %19, %cst_10 [1] : vector<16x32xf32> to vector<16xf32>
    %21 = vector.shape_cast %20 : vector<16xf32> to vector<16x1xf32>
    %cst_11 = arith.constant 3.200000e+01 : f32
    %22 = vector.broadcast %cst_11 : f32 to vector<16x1xf32>
    %23 = arith.divf %21, %22 : vector<16x1xf32>
    %24 = arith.mulf %18, %18 : vector<16x1xf32>
    %25 = arith.subf %23, %24 : vector<16x1xf32>
    %cst_12 = arith.constant 0.000000e+00 : f32
    %26 = vector.broadcast %cst_12 : f32 to vector<16x1xf32>
    %27 = arith.maximumf %25, %26 : vector<16x1xf32>
    %28 = vector.broadcast %18 : vector<16x1xf32> to vector<16x32xf32>
    %29 = arith.subf %14, %28 : vector<16x32xf32>
    %cst_13 = arith.constant 9.99999996E-13 : f32
    %30 = vector.broadcast %cst_13 : f32 to vector<16x1xf32>
    %31 = arith.addf %27, %30 : vector<16x1xf32>
    %32 = math.rsqrt %31 : vector<16x1xf32>
    %33 = vector.broadcast %32 : vector<16x1xf32> to vector<16x32xf32>
    %34 = arith.mulf %29, %33 : vector<16x32xf32>
    %c1 = arith.constant 1 : index
    %c0_14 = arith.constant 0 : index
    %35 = vector.load %arg3[%c1, %c0_14] : memref<3x32xf32, #tpu.memory_space<vmem>>, vector<1x32xf32>
    %36 = vector.broadcast %35 : vector<1x32xf32> to vector<16x32xf32>
    %37 = arith.mulf %34, %36 : vector<16x32xf32>
    %c2 = arith.constant 2 : index
    %c0_15 = arith.constant 0 : index
    %38 = vector.load %arg3[%c2, %c0_15] : memref<3x32xf32, #tpu.memory_space<vmem>>, vector<1x32xf32>
    %39 = vector.broadcast %38 : vector<1x32xf32> to vector<16x32xf32>
    %40 = arith.addf %37, %39 : vector<16x32xf32>
    %41 = arith.truncf %40 : vector<16x32xf32> to vector<16x32xbf16>
    %c0_16 = arith.constant 0 : index
    %c0_17 = arith.constant 0 : index
    %42 = vector.load %arg4[%c0_16, %c0_17] : memref<32x384xbf16, #tpu.memory_space<vmem>>, vector<32x384xbf16>
    %cst_18 = arith.constant dense<0.000000e+00> : vector<16x384xf32>
    %43 = tpu.matmul %41, %42, %cst_18 {dimension_numbers = #tpu.dot_dimension_numbers<[1], [0], [0], [1], [0, 0, 1, 1], [], []>} : vector<16x32xbf16>, vector<32x384xbf16>, vector<16x384xf32> -> vector<16x384xf32>
    %c0_19 = arith.constant 0 : index
    %c0_20 = arith.constant 0 : index
    %44 = vector.load %arg5[%c0_19, %c0_20] : memref<1x384xf32, #tpu.memory_space<vmem>>, vector<1x384xf32>
    %45 = vector.broadcast %44 : vector<1x384xf32> to vector<16x384xf32>
    %46 = arith.addf %43, %45 : vector<16x384xf32>
    %47 = vector.extract_strided_slice %46 {offsets = [0, 0], sizes = [16, 128], strides = [1, 1]} : vector<16x384xf32> to vector<16x128xf32>
    %48 = arith.truncf %47 : vector<16x128xf32> to vector<16x128xbf16>
    %c0_21 = arith.constant 0 : index
    %c0_22 = arith.constant 0 : index
    %49 = vector.load %arg6[%c0_21, %c0_22] : memref<16x128xbf16, #tpu.memory_space<vmem>>, vector<16x128xbf16>
    tpu.vector_store %arg6[%c0_21, %c0_22], %48 {strides = array<i32>} : memref<16x128xbf16, #tpu.memory_space<vmem>>, vector<16x128xbf16>,
    %50 = vector.extract_strided_slice %46 {offsets = [0, 128], sizes = [16, 128], strides = [1, 1]} : vector<16x384xf32> to vector<16x128xf32>
    %51 = arith.truncf %50 : vector<16x128xf32> to vector<16x128xbf16>
    %c0_23 = arith.constant 0 : index
    %c0_24 = arith.constant 0 : index
    %52 = vector.load %arg7[%c0_23, %c0_24] : memref<16x128xbf16, #tpu.memory_space<vmem>>, vector<16x128xbf16>
    tpu.vector_store %arg7[%c0_23, %c0_24], %51 {strides = array<i32>} : memref<16x128xbf16, #tpu.memory_space<vmem>>, vector<16x128xbf16>,
    %53 = vector.extract_strided_slice %46 {offsets = [0, 256], sizes = [16, 128], strides = [1, 1]} : vector<16x384xf32> to vector<16x128xf32>
    %54 = arith.truncf %53 : vector<16x128xf32> to vector<16x128xbf16>
    %c0_25 = arith.constant 0 : index
    %c0_26 = arith.constant 0 : index
    %55 = vector.load %arg8[%c0_25, %c0_26] : memref<16x128xbf16, #tpu.memory_space<vmem>>, vector<16x128xbf16>
    tpu.vector_store %arg8[%c0_25, %c0_26], %54 {strides = array<i32>} : memref<16x128xbf16, #tpu.memory_space<vmem>>, vector<16x128xbf16>,
    return
  }
  func.func @transform_0(%arg0: i32) -> (i32, i32) {
    %c0_i32 = arith.constant 0 : i32
    %c0_i32_0 = arith.constant 0 : i32
    return %arg0, %c0_i32 : i32, i32
  }
  func.func @transform_1(%arg0: i32) -> (i32, i32) {
    %c0_i32 = arith.constant 0 : i32
    %c0_i32_0 = arith.constant 0 : i32
    %c0_i32_1 = arith.constant 0 : i32
    return %c0_i32, %c0_i32_0 : i32, i32
  }
  func.func @transform_2(%arg0: i32) -> (i32, i32) {
    %c0_i32 = arith.constant 0 : i32
    %c0_i32_0 = arith.constant 0 : i32
    %c0_i32_1 = arith.constant 0 : i32
    return %c0_i32, %c0_i32_0 : i32, i32
  }
  func.func @transform_3(%arg0: i32) -> (i32, i32) {
    %c0_i32 = arith.constant 0 : i32
    %c0_i32_0 = arith.constant 0 : i32
    %c0_i32_1 = arith.constant 0 : i32
    return %c0_i32, %c0_i32_0 : i32, i32
  }
  func.func @transform_4(%arg0: i32) -> (i32, i32) {
    %c0_i32 = arith.constant 0 : i32
    %c0_i32_0 = arith.constant 0 : i32
    %c0_i32_1 = arith.constant 0 : i32
    return %c0_i32, %c0_i32_0 : i32, i32
  }
  func.func @transform_5(%arg0: i32) -> (i32, i32) {
    %c0_i32 = arith.constant 0 : i32
    %c0_i32_0 = arith.constant 0 : i32
    return %arg0, %c0_i32 : i32, i32
  }
  func.func @transform_6(%arg0: i32) -> (i32, i32) {
    %c0_i32 = arith.constant 0 : i32
    %c0_i32_0 = arith.constant 0 : i32
    return %arg0, %c0_i32 : i32, i32
  }
  func.func @transform_7(%arg0: i32) -> (i32, i32) {
    %c0_i32 = arith.constant 0 : i32
    %c0_i32_0 = arith.constant 0 : i32
    return %arg0, %c0_i32 : i32, i32
  }
}

module attributes {stable_mosaic.version = 11 : i64} {
  func.func @_visual_head_kernel(%arg0: i32, %arg1: memref<16x32xf32, #tpu.memory_space<vmem>>, %arg2: memref<32x32xbf16, #tpu.memory_space<vmem>>, %arg3: memref<3x32xf32, #tpu.memory_space<vmem>>, %arg4: memref<32x384xbf16, #tpu.memory_space<vmem>>, %arg5: memref<1x384xf32, #tpu.memory_space<vmem>>, %arg6: memref<16x128xbf16, #tpu.memory_space<vmem>>, %arg7: memref<16x128xbf16, #tpu.memory_space<vmem>>, %arg8: memref<16x128xbf16, #tpu.memory_space<vmem>>) attributes {dimension_semantics = [#tpu.dimension_semantics<parallel>], iteration_bounds = array<i64: 1>, scalar_prefetch = 0 : i64, scratch_operands = 0 : i64, tpu.core_type = #tpu.core_type<tc>, window_params = [{transform_indices = @transform_0, window_bounds = array<i64: 16, 32>}, {pipeline_mode = #tpu.pipeline_mode<synchronous>, transform_indices = @transform_1, window_bounds = array<i64: 32, 32>}, {pipeline_mode = #tpu.pipeline_mode<synchronous>, transform_indices = @transform_2, window_bounds = array<i64: 3, 32>}, {pipeline_mode = #tpu.pipeline_mode<synchronous>, transform_indices = @transform_3, window_bounds = array<i64: 32, 384>}, {pipeline_mode = #tpu.pipeline_mode<synchronous>, transform_indices = @transform_4, window_bounds = array<i64: 1, 384>}, {transform_indices = @transform_5, window_bounds = array<i64: 16, 128>}, {transform_indices = @transform_6, window_bounds = array<i64: 16, 128>}, {transform_indices = @transform_7, window_bounds = array<i64: 16, 128>}]} {
    %c0 = arith.constant 0 : index
    %c0_0 = arith.constant 0 : index
    %0 = vector.load %arg1[%c0, %c0_0] : memref<16x32xf32, #tpu.memory_space<vmem>>, vector<16x32xf32>
    %1 = arith.truncf %0 : vector<16x32xf32> to vector<16x32xbf16>
    %c0_1 = arith.constant 0 : index
    %c0_2 = arith.constant 0 : index
    %2 = vector.load %arg2[%c0_1, %c0_2] : memref<32x32xbf16, #tpu.memory_space<vmem>>, vector<32x32xbf16>
    %cst = arith.constant dense<0.000000e+00> : vector<16x32xf32>
    %3 = tpu.matmul %1, %2, %cst {dimension_numbers = #tpu.dot_dimension_numbers<[1], [0], [0], [1], [0, 0, 1, 1], [], []>} : vector<16x32xbf16>, vector<32x32xbf16>, vector<16x32xf32> -> vector<16x32xf32>
    %c0_3 = arith.constant 0 : index
    %c0_4 = arith.constant 0 : index
    %4 = vector.load %arg3[%c0_3, %c0_4] : memref<3x32xf32, #tpu.memory_space<vmem>>, vector<1x32xf32>
    %5 = vector.broadcast %4 : vector<1x32xf32> to vector<16x32xf32>
    %6 = arith.addf %3, %5 : vector<16x32xf32>
    %cst_5 = arith.constant 5.000000e-01 : f32
    %7 = vector.broadcast %cst_5 : f32 to vector<16x32xf32>
    %8 = arith.mulf %6, %7 : vector<16x32xf32>
    %cst_6 = arith.constant 1.41421354 : f32
    %9 = vector.broadcast %cst_6 : f32 to vector<16x32xf32>
    %10 = arith.divf %6, %9 : vector<16x32xf32>
    %11 = math.erf %10 : vector<16x32xf32>
    %cst_7 = arith.constant 1.000000e+00 : f32
    %12 = vector.broadcast %cst_7 : f32 to vector<16x32xf32>
    %13 = arith.addf %12, %11 : vector<16x32xf32>
    %14 = arith.mulf %8, %13 : vector<16x32xf32>
    %cst_8 = arith.constant dense<0.000000e+00> : vector<16xf32>
    %15 = vector.multi_reduction <add>, %14, %cst_8 [1] : vector<16x32xf32> to vector<16xf32>
    %16 = vector.shape_cast %15 : vector<16xf32> to vector<16x1xf32>
    %cst_9 = arith.constant 3.200000e+01 : f32
    %17 = vector.broadcast %cst_9 : f32 to vector<16x1xf32>
    %18 = arith.divf %16, %17 : vector<16x1xf32>
    %19 = arith.mulf %14, %14 : vector<16x32xf32>
    %cst_10 = arith.constant dense<0.000000e+00> : vector<16xf32>
    %20 = vector.multi_reduction <add>, %19, %cst_10 [1] : vector<16x32xf32> to vector<16xf32>
    %21 = vector.shape_cast %20 : vector<16xf32> to vector<16x1xf32>
    %cst_11 = arith.constant 3.200000e+01 : f32
    %22 = vector.broadcast %cst_11 : f32 to vector<16x1xf32>
    %23 = arith.divf %21, %22 : vector<16x1xf32>
    %24 = arith.mulf %18, %18 : vector<16x1xf32>
    %25 = arith.subf %23, %24 : vector<16x1xf32>
    %cst_12 = arith.constant 0.000000e+00 : f32
    %26 = vector.broadcast %cst_12 : f32 to vector<16x1xf32>
    %27 = arith.maximumf %25, %26 : vector<16x1xf32>
    %28 = vector.broadcast %18 : vector<16x1xf32> to vector<16x32xf32>
    %29 = arith.subf %14, %28 : vector<16x32xf32>
    %cst_13 = arith.constant 9.99999996E-13 : f32
    %30 = vector.broadcast %cst_13 : f32 to vector<16x1xf32>
    %31 = arith.addf %27, %30 : vector<16x1xf32>
    %32 = math.rsqrt %31 : vector<16x1xf32>
    %33 = vector.broadcast %32 : vector<16x1xf32> to vector<16x32xf32>
    %34 = arith.mulf %29, %33 : vector<16x32xf32>
    %c1 = arith.constant 1 : index
    %c0_14 = arith.constant 0 : index
    %35 = vector.load %arg3[%c1, %c0_14] : memref<3x32xf32, #tpu.memory_space<vmem>>, vector<1x32xf32>
    %36 = vector.broadcast %35 : vector<1x32xf32> to vector<16x32xf32>
    %37 = arith.mulf %34, %36 : vector<16x32xf32>
    %c2 = arith.constant 2 : index
    %c0_15 = arith.constant 0 : index
    %38 = vector.load %arg3[%c2, %c0_15] : memref<3x32xf32, #tpu.memory_space<vmem>>, vector<1x32xf32>
    %39 = vector.broadcast %38 : vector<1x32xf32> to vector<16x32xf32>
    %40 = arith.addf %37, %39 : vector<16x32xf32>
    %41 = arith.truncf %40 : vector<16x32xf32> to vector<16x32xbf16>
    %c0_16 = arith.constant 0 : index
    %c0_17 = arith.constant 0 : index
    %42 = vector.load %arg4[%c0_16, %c0_17] : memref<32x384xbf16, #tpu.memory_space<vmem>>, vector<32x384xbf16>
    %cst_18 = arith.constant dense<0.000000e+00> : vector<16x384xf32>
    %43 = tpu.matmul %41, %42, %cst_18 {dimension_numbers = #tpu.dot_dimension_numbers<[1], [0], [0], [1], [0, 0, 1, 1], [], []>} : vector<16x32xbf16>, vector<32x384xbf16>, vector<16x384xf32> -> vector<16x384xf32>
    %c0_19 = arith.constant 0 : index
    %c0_20 = arith.constant 0 : index
    %44 = vector.load %arg5[%c0_19, %c0_20] : memref<1x384xf32, #tpu.memory_space<vmem>>, vector<1x384xf32>
    %45 = vector.broadcast %44 : vector<1x384xf32> to vector<16x384xf32>
    %46 = arith.addf %43, %45 : vector<16x384xf32>
    %47 = vector.extract_strided_slice %46 {offsets = [0, 0], sizes = [16, 128], strides = [1, 1]} : vector<16x384xf32> to vector<16x128xf32>
    %48 = arith.truncf %47 : vector<16x128xf32> to vector<16x128xbf16>
    %c0_21 = arith.constant 0 : index
    %c0_22 = arith.constant 0 : index
    %49 = vector.load %arg6[%c0_21, %c0_22] : memref<16x128xbf16, #tpu.memory_space<vmem>>, vector<16x128xbf16>
    tpu.vector_store %arg6[%c0_21, %c0_22], %48 {strides = array<i32>} : memref<16x128xbf16, #tpu.memory_space<vmem>>, vector<16x128xbf16>,
    %50 = vector.extract_strided_slice %46 {offsets = [0, 128], sizes = [16, 128], strides = [1, 1]} : vector<16x384xf32> to vector<16x128xf32>
    %51 = arith.truncf %50 : vector<16x128xf32> to vector<16x128xbf16>
    %c0_23 = arith.constant 0 : index
    %c0_24 = arith.constant 0 : index
    %52 = vector.load %arg7[%c0_23, %c0_24] : memref<16x128xbf16, #tpu.memory_space<vmem>>, vector<16x128xbf16>
    tpu.vector_store %arg7[%c0_23, %c0_24], %51 {strides = array<i32>} : memref<16x128xbf16, #tpu.memory_space<vmem>>, vector<16x128xbf16>,
    %53 = vector.extract_strided_slice %46 {offsets = [0, 256], sizes = [16, 128], strides = [1, 1]} : vector<16x384xf32> to vector<16x128xf32>
    %54 = arith.truncf %53 : vector<16x128xf32> to vector<16x128xbf16>
    %c0_25 = arith.constant 0 : index
    %c0_26 = arith.constant 0 : index
    %55 = vector.load %arg8[%c0_25, %c0_26] : memref<16x128xbf16, #tpu.memory_space<vmem>>, vector<16x128xbf16>
    tpu.vector_store %arg8[%c0_25, %c0_26], %54 {strides = array<i32>} : memref<16x128xbf16, #tpu.memory_space<vmem>>, vector<16x128xbf16>,
    return
  }
  func.func @transform_0(%arg0: i32) -> (i32, i32) {
    %c0_i32 = arith.constant 0 : i32
    %c0_i32_0 = arith.constant 0 : i32
    return %arg0, %c0_i32 : i32, i32
  }
  func.func @transform_1(%arg0: i32) -> (i32, i32) {
    %c0_i32 = arith.constant 0 : i32
    %c0_i32_0 = arith.constant 0 : i32
    %c0_i32_1 = arith.constant 0 : i32
    return %c0_i32, %c0_i32_0 : i32, i32
  }
  func.func @transform_2(%arg0: i32) -> (i32, i32) {
    %c0_i32 = arith.constant 0 : i32
    %c0_i32_0 = arith.constant 0 : i32
    %c0_i32_1 = arith.constant 0 : i32
    return %c0_i32, %c0_i32_0 : i32, i32
  }
  func.func @transform_3(%arg0: i32) -> (i32, i32) {
    %c0_i32 = arith.constant 0 : i32
    %c0_i32_0 = arith.constant 0 : i32
    %c0_i32_1 = arith.constant 0 : i32
    return %c0_i32, %c0_i32_0 : i32, i32
  }
  func.func @transform_4(%arg0: i32) -> (i32, i32) {
    %c0_i32 = arith.constant 0 : i32
    %c0_i32_0 = arith.constant 0 : i32
    %c0_i32_1 = arith.constant 0 : i32
    return %c0_i32, %c0_i32_0 : i32, i32
  }
  func.func @transform_5(%arg0: i32) -> (i32, i32) {
    %c0_i32 = arith.constant 0 : i32
    %c0_i32_0 = arith.constant 0 : i32
    return %arg0, %c0_i32 : i32, i32
  }
  func.func @transform_6(%arg0: i32) -> (i32, i32) {
    %c0_i32 = arith.constant 0 : i32
    %c0_i32_0 = arith.constant 0 : i32
    return %arg0, %c0_i32 : i32, i32
  }
  func.func @transform_7(%arg0: i32) -> (i32, i32) {
    %c0_i32 = arith.constant 0 : i32
    %c0_i32_0 = arith.constant 0 : i32
    return %arg0, %c0_i32 : i32, i32
  }
}

</mosaic_0001>

<bundles_post_ra>
// kernel: tpu_custom_call.1
= control target key start
LH: loop header
LB: loop body
LE: loop exit
PB: predicated region body
PF: predicated region fallthrough
CT: control target
= control target key end

     0   :  { %13 = vsyncpa [#allocation3], 0  ;;  %s777_s0 = inlined_call_operand.hbm [shape: f32[16,32], index: 0, kind: input, shape index: {}]   ;;  %s778_s1 = inlined_call_operand.hbm [shape: bf16[32,32], index: 1, kind: input, shape index: {}]   ;;  %s779_s2 = inlined_call_operand.hbm [shape: f32[3,32], index: 2, kind: input, shape index: {}]   ;;  %s780_s3 = inlined_call_operand.hbm [shape: bf16[32,384], index: 3, kind: input, shape index: {}]   ;;  %s781_s4 = inlined_call_operand.vmem [shape: f32[1,384], index: 4, kind: input, shape index: {}]   ;;  %s782_s5 = inlined_call_operand.hbm [shape: bf16[16,128], index: 5, kind: output, shape index: {0}]   ;;  %s783_s6 = inlined_call_operand.hbm [shape: bf16[16,128], index: 6, kind: output, shape index: {1}]   ;;  %s784_s7 = inlined_call_operand.hbm [shape: bf16[16,128], index: 7, kind: output, shape index: {2}]  }
   0x1   :  { %14 = vsyncpa [#allocation6], 0 }
   0x2   :  { %15 = vsyncpa [#allocation9], 0 }
   0x3   :  { %16 = vsyncpa [#allocation4], 0 }
   0x4   :  { %17 = vsyncpa [#allocation12], 0  ;;  %s678_s24 = smov [#allocation5]  }
   0x5   :  { %s35_s25 = sshll.u32 %s678_s24, 4  ;;  %s36_s25 = int_to_ptr.vmem [resolvable:$true] %s35_s25 }
   0x6   :  { %s536_s26 = scalar_lea.vmem %s36_s25, 256  ;;  %p541_p1 = scmp.lt.s32.totalorder %s36_s25, %s36_s25 }
   0x7   :  { %p537_p0 = scmp.ne.s32.totalorder %s36_s25, %s536_s26  ;;  %p542_p2 = scmp.lt.s32.totalorder %s536_s26, %s536_s26 }
   0x9   :  { %p543_p3 = por %p542_p2, %p541_p1 }
   0xb   :  { %p544_p4 = pnand %p543_p3, %p537_p0 }
   0xd   :  { %547 = shalt.err (!%p544_p4)
}
   0xe   :  { %s679_s27 = smov 64   ;;  %s680_s28 = smov 4  }
   0xf   :  { %41 = dma.hbm_to_vmem [thread:$0]  %s778_s1, 256, %s36_s25, [#allocation6], %s679_s27, %s679_s27, %s680_s28  }
  0x10   :  { %s681_s8 = smov [#allocation2]  }
  0x11   :  { %s23_s9 = sshll.u32 %s681_s8, 4  ;;  %s24_s9 = int_to_ptr.vmem [resolvable:$true] %s23_s9 }
  0x12   :  { %s556_s10 = scalar_lea.vmem %s24_s9, 256  ;;  %p561_p6 = scmp.lt.s32.totalorder %s24_s9, %s24_s9 }
  0x13   :  { %p557_p5 = scmp.ne.s32.totalorder %s24_s9, %s556_s10  ;;  %p562_p7 = scmp.lt.s32.totalorder %s556_s10, %s556_s10 }
  0x15   :  { %p563_p8 = por %p562_p7, %p561_p6 }
  0x17   :  { %p564_p9 = pnand %p563_p8, %p557_p5 }
  0x19   :  { %567 = shalt.err (!%p564_p9)
}
  0x1a   :  { %s682_s11 = smov 128   ;;  %s683_s12 = smov 8  }
  0x1b   :  { %29 = dma.hbm_to_vmem [thread:$0]  %s777_s0, 256, %s24_s9, [#allocation3], %s682_s11, %s682_s11, %s683_s12  }
  0x1c   :  { %s684_s15 = smov [#allocation7]   ;;  %s685_s17 = smov [#allocation8]  }
  0x1d   :  { %s48_s16 = sshll.u32 %s684_s15, 4  ;;  %s57_s1 = sshll.u32 %s685_s17, 4  ;;  %s49_s16 = int_to_ptr.vmem [resolvable:$true] %s48_s16  ;;  %s58_s1 = int_to_ptr.vmem [resolvable:$true] %s57_s1 }
  0x1e   :  { %s576_s18 = scalar_lea.vmem %s49_s16, 64  ;;  %p581_p11 = scmp.lt.s32.totalorder %s49_s16, %s49_s16 }
  0x1f   :  { %p577_p10 = scmp.ne.s32.totalorder %s49_s16, %s576_s18  ;;  %p582_p12 = scmp.lt.s32.totalorder %s576_s18, %s576_s18 }
  0x21   :  { %p583_p13 = por %p582_p12, %p581_p11 }
  0x23   :  { %p584_p0 = pnand %p583_p13, %p577_p10 }
  0x25   :  { %587 = shalt.err (!%p584_p0)
}
  0x26   :  { %51 = dma.hbm_to_vmem [thread:$0]  %s779_s2, 64, %s49_s16, [#allocation6]  }
  0x27   :  { %s596_s21 = scalar_lea.vmem %s58_s1, 768  ;;  %p601_p2 = scmp.lt.s32.totalorder %s58_s1, %s58_s1 }
  0x28   :  { %p597_p1 = scmp.ne.s32.totalorder %s58_s1, %s596_s21  ;;  %p602_p3 = scmp.lt.s32.totalorder %s596_s21, %s596_s21 }
  0x2a   :  { %p603_p4 = por %p602_p3, %p601_p2 }
  0x2c   :  { %p604_p5 = pnand %p603_p4, %p597_p1 }
  0x2e   :  { %607 = shalt.err (!%p604_p5)
}
  0x2f   :  { %s686_s0 = smov 192   ;;  %s687_s22 = smov 12  }
  0x30   :  { %63 = dma.hbm_to_vmem [thread:$0]  %s780_s3, 768, %s58_s1, [#allocation9], %s686_s0, %s686_s0, %s687_s22  }
  0x31   :  { %668 = dma.done.wait [#allocation3], 256  }
  0x32   :  { %669 = vsyncadd [#allocation3], 4294967040 }
  0x33   :  { %670 = dma.done.wait [#allocation6], 320  }
  0x34   :  { %671 = vsyncadd [#allocation6], 4294966976 }
  0x35   :  { %672 = dma.done.wait [#allocation9], 768  }
  0x36   :  { %673 = vsyncadd [#allocation9], 4294966528  ;;  %v688_v0 = vmov 0.0   ;;  %vm689_vm0 = vmmov 0   ;;  %v510_v1 = vld [vmem:[#allocation5 + $0x8] sm:$0xff]   ;;  %v511_v2 = vld [vmem:[#allocation5] sm:$0xff]  }
  0x37   :  { %478 = vmatprep.subr.bf16.mxu0 %v688_v0  ;;  %482 = vmatprep.mubr.msk.bf16.mxu0 %vm689_vm0, %v688_v0  ;;  %v79_v3 = vld [vmem:[#allocation2] sm:$0xff]  ;;  %v80_v4 = vld [vmem:[#allocation2 + $0x8] sm:$0xff]  ;;  %vm103_vm1 = vcmask 261120   ;;  %v690_v35 = vmov 0   ;;  %s691_s25 = smov [#allocation10]   ;;  %s692_s29 = smov [#allocation11]  }
  0x38   :  { %479 = vmatpush3.bf16.msra.mxu0 %v510_v1  ;;  %v81_v5 = vpack.c.bf16 %v80_v4, %v79_v3  ;;  %v431_v6 = vld [vmem:[#allocation7] ss:$0 sm:$0xff]  ;;  %v514_v30 = vld [vmem:[#allocation8 + $0x18] ss:$12 sps:$4 sm:$0xff]   ;;  %v515_v31 = vld [vmem:[#allocation8 + $0x20] ss:$12 sps:$4 sm:$0xff]   ;;  %299 = vmatprep.mubr.bf16.mxu1 %v690_v35  ;;  %v217_v1 = vlaneseq }
  0x39   :  { %480 = vmatprep.subr.bf16.mxu0 %v688_v0  ;;  %v512_v29 = vld [vmem:[#allocation8 + $0x1c] ss:$12 sps:$4 sm:$0xff]   ;;  %v516_v32 = vld [vmem:[#allocation8 + $0x4] ss:$12 sps:$4 sm:$0xff]   ;;  %v518_v34 = vld [vmem:[#allocation8] ss:$12 sps:$4 sm:$0xff]  }
  0x3a   :  { %279 = vmatprep.subr.bf16.mxu1 %v512_v29  ;;  %v519_v33 = vld [vmem:[#allocation8 + $0x8] ss:$12 sps:$4 sm:$0xff]   ;;  %v435_v55 = vld [vmem:[#allocation7 + $0x1] ss:$0 sm:$0xff]  ;;  %v436_v60 = vld [vmem:[#allocation7 + $0x2] ss:$0 sm:$0xff] }
  0x3b   :  { %280 = vmatpush1.bf16.msra.mxu1 %v514_v30  ;;  %s386_s26 = sshll.u32 %s691_s25, 4  ;;  %s693_s30 = smov [#allocation13]   ;;  %s387_s26 = int_to_ptr.vmem [resolvable:$true] %s386_s26 }
  0x3c   :  { %481 = vmatpush3.bf16.msra.mxu0 %v511_v2  ;;  %281 = vmatprep.subr.bf16.mxu1 %v516_v32  ;;  %v218_v2 = vshrl.u32 %v217_v1, 7  ;;  %s410_s8 = sshll.u32 %s693_s30, 4  ;;  %s608_s9 = scalar_lea.vmem %s387_s26, 128  ;;  %s411_s8 = int_to_ptr.vmem [resolvable:$true] %s410_s8 }
  0x3d   :  { %486 = vmatprep.subr.bf16.mxu0 %v688_v0  ;;  %p609_p6 = scmp.ne.s32.totalorder %s387_s26, %s608_s9  ;;  %p613_p7 = scmp.lt.s32.totalorder %s387_s26, %s387_s26 }
  0x3e   :  { %v219_v3 = vsub.s32 0, %v218_v2  ;;  %v227_v4 = vsub.s32 2, %v218_v2  ;;  %p614_p8 = scmp.lt.s32.totalorder %s608_s9, %s608_s9 }
  0x3f   :  { %483 = vmatmul.mubr.msk.bf16.vlgmr.msra.gmra.mxu0 %vm103_vm1, %v81_v5  ;;  %282 = vmatpush1.bf16.msra.mxu1 %v518_v34  ;;  %v215_v5 = vld [vmem:[%s781_s4] sm:$0x7]  ;;  %s398_s4 = sshll.u32 %s692_s29, 4  ;;  %s399_s4 = int_to_ptr.vmem [resolvable:$true] %s398_s4 }
  0x40   :  { %490 = vmatprep.mubr.msk.bf16.mxu0 %vm689_vm0, %v688_v0  ;;  %487 = vmatpush3.bf16.msra.mxu0 %v515_v31  ;;  %p615_p9 = por %p614_p8, %p613_p7 }
  0x41   :  { %488 = vmatprep.subr.bf16.mxu0 %v688_v0 }
  0x42   :  { %p616_p10 = pnand %p615_p9, %p609_p6 }
  0x44   :  { %489 = vmatpush3.bf16.msra.mxu0 %v519_v33 }
  0xff   :  { %v141_v7 = vpop.f32.mrf.mxu0 }
 0x100   :  { %v142_v8 = vadd.f32 %v431_v6, %v141_v7 }
 0x101   :  { %v484_v9 = vpop.f32.mrf.mxu0 }
 0x102   :  { %v151_v10 = vmul.f32 0.70710677, %v142_v8  ;;  %v148_v16 = vmul.f32 0.5, %v142_v8  ;;  %v220_v9 = vrot.slane %v215_v5, %v219_v3 }
 0x103   :  { %v144_v11 = vpop.f32.mrf.mxu0 }
 0x104   :  { %520 = verf.f32 %v151_v10  ;;  %v145_v12 = vadd.f32 %v431_v6, %v144_v11  ;;  %v223_v6 = vsub.s32 1, %v218_v2  ;;  %v228_v10 = vrot.slane %v215_v5, %v227_v4 }
 0x105   :  { %v485_v13 = vpop.f32.mrf.mxu0 }
 0x106   :  { %v152_v14 = vmul.f32 0.70710677, %v145_v12  ;;  %v149_v20 = vmul.f32 0.5, %v145_v12  ;;  %v224_v13 = vrot.slane %v215_v5, %v223_v6 }
 0x108   :  { %522 = verf.f32 %v152_v14 }
 0x111   :  { %v521_v15 = vpop.eup %520 }
 0x112   :  { %v155_v17 = vadd.f32 1.0, %v521_v15 }
 0x114   :  { %v157_v18 = vmul.f32 %v155_v17, %v148_v16 }
 0x115   :  { %v523_v19 = vpop.eup %522 }
 0x116   :  { %v156_v21 = vadd.f32 1.0, %v523_v19  ;;  %v159_v22 = vsel %vm103_vm1, %v157_v18, 0.0  ;;  %v168_v23 = vmul.f32 %v157_v18, %v157_v18 }
 0x117   :  { %160 = vadd.xlane.f32.xlu0 %v159_v22 }
 0x118   :  { %v158_v24 = vmul.f32 %v156_v21, %v149_v20  ;;  %v170_v25 = vsel %vm103_vm1, %v168_v23, 0.0 }
 0x119   :  { %171 = vadd.xlane.f32.xlu1 %v170_v25 }
 0x11a   :  { %v162_v26 = vsel %vm103_vm1, %v158_v24, 0.0  ;;  %v169_v27 = vmul.f32 %v158_v24, %v158_v24 }
 0x11b   :  { %163 = vadd.xlane.f32.xlu0 %v162_v26 }
 0x11c   :  { %v173_v28 = vsel %vm103_vm1, %v169_v27, 0.0 }
 0x11d   :  { %174 = vadd.xlane.f32.xlu1 %v173_v28 }
 0x1a0   :  { %v161_v36 = vpop.xlane.xlu0 %160 }
 0x1a1   :  { %v166_v37 = vmul.f32 0.03125, %v161_v36 }
 0x1a2   :  { %v172_v38 = vpop.xlane.xlu1 %171 }
 0x1a3   :  { %v178_v39 = vmul.f32 %v166_v37, %v166_v37  ;;  %v176_v40 = vmul.f32 0.03125, %v172_v38  ;;  %v184_v52 = vsub.f32 %v157_v18, %v166_v37 }
 0x1a4   :  { %v164_v41 = vpop.xlane.xlu0 %163 }
 0x1a5   :  { %v180_v42 = vsub.f32 %v176_v40, %v178_v39  ;;  %v167_v43 = vmul.f32 0.03125, %v164_v41 }
 0x1a6   :  { %v175_v44 = vpop.xlane.xlu1 %174 }
 0x1a7   :  { %v182_v45 = vmax.f32 %v180_v42, 0.0  ;;  %v179_v46 = vmul.f32 %v167_v43, %v167_v43  ;;  %v177_v47 = vmul.f32 0.03125, %v175_v44  ;;  %v185_v56 = vsub.f32 %v158_v24, %v167_v43 }
 0x1a9   :  { %v186_v48 = vadd.f32 1e-12, %v182_v45  ;;  %v181_v49 = vsub.f32 %v177_v47, %v179_v46 }
 0x1ab   :  { %524 = vrsqrt.f32 %v186_v48  ;;  %v183_v50 = vmax.f32 %v181_v49, 0.0 }
 0x1ad   :  { %v187_v51 = vadd.f32 1e-12, %v183_v50 }
 0x1af   :  { %526 = vrsqrt.f32 %v187_v51 }
 0x1b8   :  { %v525_v53 = vpop.eup %524 }
 0x1b9   :  { %v190_v54 = vmul.f32 %v525_v53, %v184_v52 }
 0x1bb   :  { %v197_v59 = vmul.f32 %v435_v55, %v190_v54 }
 0x1bc   :  { %v527_v57 = vpop.eup %526 }
 0x1bd   :  { %v191_v58 = vmul.f32 %v527_v57, %v185_v56  ;;  %v204_v62 = vadd.f32 %v436_v60, %v197_v59 }
 0x1bf   :  { %v198_v61 = vmul.f32 %v435_v55, %v191_v58 }
 0x1c1   :  { %v205_v63 = vadd.f32 %v436_v60, %v198_v61 }
 0x1c3   :  { %v206_v0 = vpack.c.bf16 %v205_v63, %v204_v62 }
 0x1c5   :  { %443 = vmatmul.mubr.msk.bf16.vlgmr.msra.gmra.mxu1 %vm103_vm1, %v206_v0  ;;  %491 = vmatmul.mubr.msk.bf16.vlgmr.msra.gmra.mxu0 %vm103_vm1, %v206_v0 }
 0x285   :  { %v301_v7 = vpop.f32.mrf.mxu1  ;;  %v344_v8 = vpop.f32.mrf.mxu0 }
 0x286   :  { %v302_v16 = vadd.f32 %v301_v7, %v220_v9  ;;  %v345_v17 = vadd.f32 %v344_v8, %v228_v10 }
 0x287   :  { %v303_v11 = vpop.f32.mrf.mxu1  ;;  %v492_v12 = vpop.f32.mrf.mxu0 }
 0x288   :  { %v304_v22 = vadd.f32 %v303_v11, %v224_v13 }
 0x289   :  { %v305_v14 = vpop.f32.mrf.mxu1  ;;  %v347_v15 = vpop.f32.mrf.mxu0 }
 0x28a   :  { %v306_v18 = vadd.f32 %v305_v14, %v220_v9  ;;  %v348_v19 = vadd.f32 %v347_v15, %v228_v10 }
 0x28b   :  { %v307_v20 = vpop.f32.mrf.mxu1  ;;  %v493_v21 = vpop.f32.mrf.mxu0 }
 0x28c   :  { %v460_v23 = vpack.c.bf16 %v306_v18, %v302_v16  ;;  %v470_v24 = vpack.c.bf16 %v348_v19, %v345_v17  ;;  %v308_v25 = vadd.f32 %v307_v20, %v224_v13 }
 0x28e   :  { %461 = vst [vmem:[#allocation10] sm:$0xff] %v460_v23   ;;  %471 = vst [vmem:[#allocation13] sm:$0xff] %v470_v24   ;;  %v465_v26 = vpack.c.bf16 %v308_v25, %v304_v22 }
 0x28f   :  { %619 = shalt.err (!%p616_p10)
}
 0x290   :  { %392 = dma.vmem_to_hbm [thread:$0]  %s387_s26, 128, %s782_s5, [#allocation4], %s679_s27, %s679_s27, %s680_s28   ;;  %466 = vst [vmem:[#allocation11] sm:$0xff] %v465_v26  }
 0x291   :  { %s628_s12 = scalar_lea.vmem %s399_s4, 128  ;;  %p633_p12 = scmp.lt.s32.totalorder %s399_s4, %s399_s4 }
 0x292   :  { %p629_p11 = scmp.ne.s32.totalorder %s399_s4, %s628_s12  ;;  %p634_p13 = scmp.lt.s32.totalorder %s628_s12, %s628_s12 }
 0x294   :  { %p635_p0 = por %p634_p13, %p633_p12 }
 0x296   :  { %p636_p1 = pnand %p635_p0, %p629_p11 }
 0x298   :  { %639 = shalt.err (!%p636_p1)
}
 0x299   :  { %404 = dma.vmem_to_hbm [thread:$0]  %s399_s4, 128, %s783_s6, [#allocation12], %s679_s27, %s679_s27, %s680_s28  }
 0x29a   :  { %s648_s15 = scalar_lea.vmem %s411_s8, 128  ;;  %p653_p3 = scmp.lt.s32.totalorder %s411_s8, %s411_s8 }
 0x29b   :  { %p649_p2 = scmp.ne.s32.totalorder %s411_s8, %s648_s15  ;;  %p654_p4 = scmp.lt.s32.totalorder %s648_s15, %s648_s15 }
 0x29d   :  { %p655_p5 = por %p654_p4, %p653_p3 }
 0x29f   :  { %p656_p6 = pnand %p655_p5, %p649_p2 }
 0x2a1   :  { %659 = shalt.err (!%p656_p6)
}
 0x2a2   :  { %416 = dma.vmem_to_hbm [thread:$0]  %s411_s8, 128, %s784_s7, [#allocation12], %s679_s27, %s679_s27, %s680_s28  }
 0x2a3   :  { %674 = dma.done.wait [#allocation4], 128  }
 0x2a4   :  { %675 = vsyncadd [#allocation4], 4294967168 }
 0x2a5   :  { %676 = dma.done.wait [#allocation12], 256  }
 0x2a6   :  { %677 = vsyncadd [#allocation12], 4294967040 }
 0x2a7   :  { %426 = vsyncpa [#allocation3], 1 }
 0x2a8   :  { %427 = vsyncpa [#allocation6], 1 }
 0x2a9   :  { %428 = vsyncpa [#allocation9], 1 }
 0x2aa   :  { %429 = vsyncpa [#allocation4], 1 }
 0x2ab   :  { %430 = vsyncpa [#allocation12], 1 }

// kernel: tpu_custom_call.1
= control target key start
LH: loop header
LB: loop body
LE: loop exit
PB: predicated region body
PF: predicated region fallthrough
CT: control target
= control target key end

     0   :  { %13 = vsyncpa [#allocation3], 0  ;;  %s777_s0 = inlined_call_operand.hbm [shape: f32[16,32], index: 0, kind: input, shape index: {}]   ;;  %s778_s1 = inlined_call_operand.hbm [shape: bf16[32,32], index: 1, kind: input, shape index: {}]   ;;  %s779_s2 = inlined_call_operand.hbm [shape: f32[3,32], index: 2, kind: input, shape index: {}]   ;;  %s780_s3 = inlined_call_operand.hbm [shape: bf16[32,384], index: 3, kind: input, shape index: {}]   ;;  %s781_s4 = inlined_call_operand.vmem [shape: f32[1,384], index: 4, kind: input, shape index: {}]   ;;  %s782_s5 = inlined_call_operand.hbm [shape: bf16[16,128], index: 5, kind: output, shape index: {0}]   ;;  %s783_s6 = inlined_call_operand.hbm [shape: bf16[16,128], index: 6, kind: output, shape index: {1}]   ;;  %s784_s7 = inlined_call_operand.hbm [shape: bf16[16,128], index: 7, kind: output, shape index: {2}]  }
   0x1   :  { %14 = vsyncpa [#allocation6], 0 }
   0x2   :  { %15 = vsyncpa [#allocation9], 0 }
   0x3   :  { %16 = vsyncpa [#allocation4], 0 }
   0x4   :  { %17 = vsyncpa [#allocation12], 0  ;;  %s678_s24 = smov [#allocation5]  }
   0x5   :  { %s35_s25 = sshll.u32 %s678_s24, 4  ;;  %s36_s25 = int_to_ptr.vmem [resolvable:$true] %s35_s25 }
   0x6   :  { %s536_s26 = scalar_lea.vmem %s36_s25, 256  ;;  %p541_p1 = scmp.lt.s32.totalorder %s36_s25, %s36_s25 }
   0x7   :  { %p537_p0 = scmp.ne.s32.totalorder %s36_s25, %s536_s26  ;;  %p542_p2 = scmp.lt.s32.totalorder %s536_s26, %s536_s26 }
   0x9   :  { %p543_p3 = por %p542_p2, %p541_p1 }
   0xb   :  { %p544_p4 = pnand %p543_p3, %p537_p0 }
   0xd   :  { %547 = shalt.err (!%p544_p4)
}
   0xe   :  { %s679_s27 = smov 64   ;;  %s680_s28 = smov 4  }
   0xf   :  { %41 = dma.hbm_to_vmem [thread:$0]  %s778_s1, 256, %s36_s25, [#allocation6], %s679_s27, %s679_s27, %s680_s28  }
  0x10   :  { %s681_s8 = smov [#allocation2]  }
  0x11   :  { %s23_s9 = sshll.u32 %s681_s8, 4  ;;  %s24_s9 = int_to_ptr.vmem [resolvable:$true] %s23_s9 }
  0x12   :  { %s556_s10 = scalar_lea.vmem %s24_s9, 256  ;;  %p561_p6 = scmp.lt.s32.totalorder %s24_s9, %s24_s9 }
  0x13   :  { %p557_p5 = scmp.ne.s32.totalorder %s24_s9, %s556_s10  ;;  %p562_p7 = scmp.lt.s32.totalorder %s556_s10, %s556_s10 }
  0x15   :  { %p563_p8 = por %p562_p7, %p561_p6 }
  0x17   :  { %p564_p9 = pnand %p563_p8, %p557_p5 }
  0x19   :  { %567 = shalt.err (!%p564_p9)
}
  0x1a   :  { %s682_s11 = smov 128   ;;  %s683_s12 = smov 8  }
  0x1b   :  { %29 = dma.hbm_to_vmem [thread:$0]  %s777_s0, 256, %s24_s9, [#allocation3], %s682_s11, %s682_s11, %s683_s12  }
  0x1c   :  { %s684_s15 = smov [#allocation7]   ;;  %s685_s17 = smov [#allocation8]  }
  0x1d   :  { %s48_s16 = sshll.u32 %s684_s15, 4  ;;  %s57_s1 = sshll.u32 %s685_s17, 4  ;;  %s49_s16 = int_to_ptr.vmem [resolvable:$true] %s48_s16  ;;  %s58_s1 = int_to_ptr.vmem [resolvable:$true] %s57_s1 }
  0x1e   :  { %s576_s18 = scalar_lea.vmem %s49_s16, 64  ;;  %p581_p11 = scmp.lt.s32.totalorder %s49_s16, %s49_s16 }
  0x1f   :  { %p577_p10 = scmp.ne.s32.totalorder %s49_s16, %s576_s18  ;;  %p582_p12 = scmp.lt.s32.totalorder %s576_s18, %s576_s18 }
  0x21   :  { %p583_p13 = por %p582_p12, %p581_p11 }
  0x23   :  { %p584_p0 = pnand %p583_p13, %p577_p10 }
  0x25   :  { %587 = shalt.err (!%p584_p0)
}
  0x26   :  { %51 = dma.hbm_to_vmem [thread:$0]  %s779_s2, 64, %s49_s16, [#allocation6]  }
  0x27   :  { %s596_s21 = scalar_lea.vmem %s58_s1, 768  ;;  %p601_p2 = scmp.lt.s32.totalorder %s58_s1, %s58_s1 }
  0x28   :  { %p597_p1 = scmp.ne.s32.totalorder %s58_s1, %s596_s21  ;;  %p602_p3 = scmp.lt.s32.totalorder %s596_s21, %s596_s21 }
  0x2a   :  { %p603_p4 = por %p602_p3, %p601_p2 }
  0x2c   :  { %p604_p5 = pnand %p603_p4, %p597_p1 }
  0x2e   :  { %607 = shalt.err (!%p604_p5)
}
  0x2f   :  { %s686_s0 = smov 192   ;;  %s687_s22 = smov 12  }
  0x30   :  { %63 = dma.hbm_to_vmem [thread:$0]  %s780_s3, 768, %s58_s1, [#allocation9], %s686_s0, %s686_s0, %s687_s22  }
  0x31   :  { %668 = dma.done.wait [#allocation3], 256  }
  0x32   :  { %669 = vsyncadd [#allocation3], 4294967040 }
  0x33   :  { %670 = dma.done.wait [#allocation6], 320  }
  0x34   :  { %671 = vsyncadd [#allocation6], 4294966976 }
  0x35   :  { %672 = dma.done.wait [#allocation9], 768  }
  0x36   :  { %673 = vsyncadd [#allocation9], 4294966528  ;;  %v688_v0 = vmov 0.0   ;;  %vm689_vm0 = vmmov 0   ;;  %v510_v1 = vld [vmem:[#allocation5 + $0x8] sm:$0xff]   ;;  %v511_v2 = vld [vmem:[#allocation5] sm:$0xff]  }
  0x37   :  { %478 = vmatprep.subr.bf16.mxu0 %v688_v0  ;;  %482 = vmatprep.mubr.msk.bf16.mxu0 %vm689_vm0, %v688_v0  ;;  %v79_v3 = vld [vmem:[#allocation2] sm:$0xff]  ;;  %v80_v4 = vld [vmem:[#allocation2 + $0x8] sm:$0xff]  ;;  %vm103_vm1 = vcmask 261120   ;;  %v690_v35 = vmov 0   ;;  %s691_s25 = smov [#allocation10]   ;;  %s692_s29 = smov [#allocation11]  }
  0x38   :  { %479 = vmatpush3.bf16.msra.mxu0 %v510_v1  ;;  %v81_v5 = vpack.c.bf16 %v80_v4, %v79_v3  ;;  %v431_v6 = vld [vmem:[#allocation7] ss:$0 sm:$0xff]  ;;  %v514_v30 = vld [vmem:[#allocation8 + $0x18] ss:$12 sps:$4 sm:$0xff]   ;;  %v515_v31 = vld [vmem:[#allocation8 + $0x20] ss:$12 sps:$4 sm:$0xff]   ;;  %299 = vmatprep.mubr.bf16.mxu1 %v690_v35  ;;  %v217_v1 = vlaneseq }
  0x39   :  { %480 = vmatprep.subr.bf16.mxu0 %v688_v0  ;;  %v512_v29 = vld [vmem:[#allocation8 + $0x1c] ss:$12 sps:$4 sm:$0xff]   ;;  %v516_v32 = vld [vmem:[#allocation8 + $0x4] ss:$12 sps:$4 sm:$0xff]   ;;  %v518_v34 = vld [vmem:[#allocation8] ss:$12 sps:$4 sm:$0xff]  }
  0x3a   :  { %279 = vmatprep.subr.bf16.mxu1 %v512_v29  ;;  %v519_v33 = vld [vmem:[#allocation8 + $0x8] ss:$12 sps:$4 sm:$0xff]   ;;  %v435_v55 = vld [vmem:[#allocation7 + $0x1] ss:$0 sm:$0xff]  ;;  %v436_v60 = vld [vmem:[#allocation7 + $0x2] ss:$0 sm:$0xff] }
  0x3b   :  { %280 = vmatpush1.bf16.msra.mxu1 %v514_v30  ;;  %s386_s26 = sshll.u32 %s691_s25, 4  ;;  %s693_s30 = smov [#allocation13]   ;;  %s387_s26 = int_to_ptr.vmem [resolvable:$true] %s386_s26 }
  0x3c   :  { %481 = vmatpush3.bf16.msra.mxu0 %v511_v2  ;;  %281 = vmatprep.subr.bf16.mxu1 %v516_v32  ;;  %v218_v2 = vshrl.u32 %v217_v1, 7  ;;  %s410_s8 = sshll.u32 %s693_s30, 4  ;;  %s608_s9 = scalar_lea.vmem %s387_s26, 128  ;;  %s411_s8 = int_to_ptr.vmem [resolvable:$true] %s410_s8 }
  0x3d   :  { %486 = vmatprep.subr.bf16.mxu0 %v688_v0  ;;  %p609_p6 = scmp.ne.s32.totalorder %s387_s26, %s608_s9  ;;  %p613_p7 = scmp.lt.s32.totalorder %s387_s26, %s387_s26 }
  0x3e   :  { %v219_v3 = vsub.s32 0, %v218_v2  ;;  %v227_v4 = vsub.s32 2, %v218_v2  ;;  %p614_p8 = scmp.lt.s32.totalorder %s608_s9, %s608_s9 }
  0x3f   :  { %483 = vmatmul.mubr.msk.bf16.vlgmr.msra.gmra.mxu0 %vm103_vm1, %v81_v5  ;;  %282 = vmatpush1.bf16.msra.mxu1 %v518_v34  ;;  %v215_v5 = vld [vmem:[%s781_s4] sm:$0x7]  ;;  %s398_s4 = sshll.u32 %s692_s29, 4  ;;  %s399_s4 = int_to_ptr.vmem [resolvable:$true] %s398_s4 }
  0x40   :  { %490 = vmatprep.mubr.msk.bf16.mxu0 %vm689_vm0, %v688_v0  ;;  %487 = vmatpush3.bf16.msra.mxu0 %v515_v31  ;;  %p615_p9 = por %p614_p8, %p613_p7 }
  0x41   :  { %488 = vmatprep.subr.bf16.mxu0 %v688_v0 }
  0x42   :  { %p616_p10 = pnand %p615_p9, %p609_p6 }
  0x44   :  { %489 = vmatpush3.bf16.msra.mxu0 %v519_v33 }
  0xff   :  { %v141_v7 = vpop.f32.mrf.mxu0 }
 0x100   :  { %v142_v8 = vadd.f32 %v431_v6, %v141_v7 }
 0x101   :  { %v484_v9 = vpop.f32.mrf.mxu0 }
 0x102   :  { %v151_v10 = vmul.f32 0.70710677, %v142_v8  ;;  %v148_v16 = vmul.f32 0.5, %v142_v8  ;;  %v220_v9 = vrot.slane %v215_v5, %v219_v3 }
 0x103   :  { %v144_v11 = vpop.f32.mrf.mxu0 }
 0x104   :  { %520 = verf.f32 %v151_v10  ;;  %v145_v12 = vadd.f32 %v431_v6, %v144_v11  ;;  %v223_v6 = vsub.s32 1, %v218_v2  ;;  %v228_v10 = vrot.slane %v215_v5, %v227_v4 }
 0x105   :  { %v485_v13 = vpop.f32.mrf.mxu0 }
 0x106   :  { %v152_v14 = vmul.f32 0.70710677, %v145_v12  ;;  %v149_v20 = vmul.f32 0.5, %v145_v12  ;;  %v224_v13 = vrot.slane %v215_v5, %v223_v6 }
 0x108   :  { %522 = verf.f32 %v152_v14 }
 0x111   :  { %v521_v15 = vpop.eup %520 }
 0x112   :  { %v155_v17 = vadd.f32 1.0, %v521_v15 }
 0x114   :  { %v157_v18 = vmul.f32 %v155_v17, %v148_v16 }
 0x115   :  { %v523_v19 = vpop.eup %522 }
 0x116   :  { %v156_v21 = vadd.f32 1.0, %v523_v19  ;;  %v159_v22 = vsel %vm103_vm1, %v157_v18, 0.0  ;;  %v168_v23 = vmul.f32 %v157_v18, %v157_v18 }
 0x117   :  { %160 = vadd.xlane.f32.xlu0 %v159_v22 }
 0x118   :  { %v158_v24 = vmul.f32 %v156_v21, %v149_v20  ;;  %v170_v25 = vsel %vm103_vm1, %v168_v23, 0.0 }
 0x119   :  { %171 = vadd.xlane.f32.xlu1 %v170_v25 }
 0x11a   :  { %v162_v26 = vsel %vm103_vm1, %v158_v24, 0.0  ;;  %v169_v27 = vmul.f32 %v158_v24, %v158_v24 }
 0x11b   :  { %163 = vadd.xlane.f32.xlu0 %v162_v26 }
 0x11c   :  { %v173_v28 = vsel %vm103_vm1, %v169_v27, 0.0 }
 0x11d   :  { %174 = vadd.xlane.f32.xlu1 %v173_v28 }
 0x1a0   :  { %v161_v36 = vpop.xlane.xlu0 %160 }
 0x1a1   :  { %v166_v37 = vmul.f32 0.03125, %v161_v36 }
 0x1a2   :  { %v172_v38 = vpop.xlane.xlu1 %171 }
 0x1a3   :  { %v178_v39 = vmul.f32 %v166_v37, %v166_v37  ;;  %v176_v40 = vmul.f32 0.03125, %v172_v38  ;;  %v184_v52 = vsub.f32 %v157_v18, %v166_v37 }
 0x1a4   :  { %v164_v41 = vpop.xlane.xlu0 %163 }
 0x1a5   :  { %v180_v42 = vsub.f32 %v176_v40, %v178_v39  ;;  %v167_v43 = vmul.f32 0.03125, %v164_v41 }
 0x1a6   :  { %v175_v44 = vpop.xlane.xlu1 %174 }
 0x1a7   :  { %v182_v45 = vmax.f32 %v180_v42, 0.0  ;;  %v179_v46 = vmul.f32 %v167_v43, %v167_v43  ;;  %v177_v47 = vmul.f32 0.03125, %v175_v44  ;;  %v185_v56 = vsub.f32 %v158_v24, %v167_v43 }
 0x1a9   :  { %v186_v48 = vadd.f32 1e-12, %v182_v45  ;;  %v181_v49 = vsub.f32 %v177_v47, %v179_v46 }
 0x1ab   :  { %524 = vrsqrt.f32 %v186_v48  ;;  %v183_v50 = vmax.f32 %v181_v49, 0.0 }
 0x1ad   :  { %v187_v51 = vadd.f32 1e-12, %v183_v50 }
 0x1af   :  { %526 = vrsqrt.f32 %v187_v51 }
 0x1b8   :  { %v525_v53 = vpop.eup %524 }
 0x1b9   :  { %v190_v54 = vmul.f32 %v525_v53, %v184_v52 }
 0x1bb   :  { %v197_v59 = vmul.f32 %v435_v55, %v190_v54 }
 0x1bc   :  { %v527_v57 = vpop.eup %526 }
 0x1bd   :  { %v191_v58 = vmul.f32 %v527_v57, %v185_v56  ;;  %v204_v62 = vadd.f32 %v436_v60, %v197_v59 }
 0x1bf   :  { %v198_v61 = vmul.f32 %v435_v55, %v191_v58 }
 0x1c1   :  { %v205_v63 = vadd.f32 %v436_v60, %v198_v61 }
 0x1c3   :  { %v206_v0 = vpack.c.bf16 %v205_v63, %v204_v62 }
 0x1c5   :  { %443 = vmatmul.mubr.msk.bf16.vlgmr.msra.gmra.mxu1 %vm103_vm1, %v206_v0  ;;  %491 = vmatmul.mubr.msk.bf16.vlgmr.msra.gmra.mxu0 %vm103_vm1, %v206_v0 }
 0x285   :  { %v301_v7 = vpop.f32.mrf.mxu1  ;;  %v344_v8 = vpop.f32.mrf.mxu0 }
 0x286   :  { %v302_v16 = vadd.f32 %v301_v7, %v220_v9  ;;  %v345_v17 = vadd.f32 %v344_v8, %v228_v10 }
 0x287   :  { %v303_v11 = vpop.f32.mrf.mxu1  ;;  %v492_v12 = vpop.f32.mrf.mxu0 }
 0x288   :  { %v304_v22 = vadd.f32 %v303_v11, %v224_v13 }
 0x289   :  { %v305_v14 = vpop.f32.mrf.mxu1  ;;  %v347_v15 = vpop.f32.mrf.mxu0 }
 0x28a   :  { %v306_v18 = vadd.f32 %v305_v14, %v220_v9  ;;  %v348_v19 = vadd.f32 %v347_v15, %v228_v10 }
 0x28b   :  { %v307_v20 = vpop.f32.mrf.mxu1  ;;  %v493_v21 = vpop.f32.mrf.mxu0 }
 0x28c   :  { %v460_v23 = vpack.c.bf16 %v306_v18, %v302_v16  ;;  %v470_v24 = vpack.c.bf16 %v348_v19, %v345_v17  ;;  %v308_v25 = vadd.f32 %v307_v20, %v224_v13 }
 0x28e   :  { %461 = vst [vmem:[#allocation10] sm:$0xff] %v460_v23   ;;  %471 = vst [vmem:[#allocation13] sm:$0xff] %v470_v24   ;;  %v465_v26 = vpack.c.bf16 %v308_v25, %v304_v22 }
 0x28f   :  { %619 = shalt.err (!%p616_p10)
}
 0x290   :  { %392 = dma.vmem_to_hbm [thread:$0]  %s387_s26, 128, %s782_s5, [#allocation4], %s679_s27, %s679_s27, %s680_s28   ;;  %466 = vst [vmem:[#allocation11] sm:$0xff] %v465_v26  }
 0x291   :  { %s628_s12 = scalar_lea.vmem %s399_s4, 128  ;;  %p633_p12 = scmp.lt.s32.totalorder %s399_s4, %s399_s4 }
 0x292   :  { %p629_p11 = scmp.ne.s32.totalorder %s399_s4, %s628_s12  ;;  %p634_p13 = scmp.lt.s32.totalorder %s628_s12, %s628_s12 }
 0x294   :  { %p635_p0 = por %p634_p13, %p633_p12 }
 0x296   :  { %p636_p1 = pnand %p635_p0, %p629_p11 }
 0x298   :  { %639 = shalt.err (!%p636_p1)
}
 0x299   :  { %404 = dma.vmem_to_hbm [thread:$0]  %s399_s4, 128, %s783_s6, [#allocation12], %s679_s27, %s679_s27, %s680_s28  }
 0x29a   :  { %s648_s15 = scalar_lea.vmem %s411_s8, 128  ;;  %p653_p3 = scmp.lt.s32.totalorder %s411_s8, %s411_s8 }
 0x29b   :  { %p649_p2 = scmp.ne.s32.totalorder %s411_s8, %s648_s15  ;;  %p654_p4 = scmp.lt.s32.totalorder %s648_s15, %s648_s15 }
 0x29d   :  { %p655_p5 = por %p654_p4, %p653_p3 }
 0x29f   :  { %p656_p6 = pnand %p655_p5, %p649_p2 }
 0x2a1   :  { %659 = shalt.err (!%p656_p6)
}
 0x2a2   :  { %416 = dma.vmem_to_hbm [thread:$0]  %s411_s8, 128, %s784_s7, [#allocation12], %s679_s27, %s679_s27, %s680_s28  }
 0x2a3   :  { %674 = dma.done.wait [#allocation4], 128  }
 0x2a4   :  { %675 = vsyncadd [#allocation4], 4294967168 }
 0x2a5   :  { %676 = dma.done.wait [#allocation12], 256  }
 0x2a6   :  { %677 = vsyncadd [#allocation12], 4294967040 }
 0x2a7   :  { %426 = vsyncpa [#allocation3], 1 }
 0x2a8   :  { %427 = vsyncpa [#allocation6], 1 }
 0x2a9   :  { %428 = vsyncpa [#allocation9], 1 }
 0x2aa   :  { %429 = vsyncpa [#allocation4], 1 }
 0x2ab   :  { %430 = vsyncpa [#allocation12], 1 }

</bundles_post_ra>
